<compile_context>
chip_gen: v7x
topology: tpu7x:2x2x1
jax: 0.10.0
libtpu: 0.0.40
codegen_flags: <defaults>
</compile_context>

<pallas_src>
import jax
import jax.numpy as jnp
from jax.experimental import pallas as pl
from jax.experimental.pallas import tpu as pltpu


def _round_up(x, m):
    return ((x + m - 1) // m) * m


def _vmem_budget():
    """Generation-aware usable VMEM budget (bytes) and a 'small-VMEM chip' flag."""
    try:
        cap = int(pltpu.get_tpu_info().vmem_capacity_bytes)
    except Exception:  # pragma: no cover - conservative fallback
        cap = 64 << 20
    budget = int(cap * 0.80)          # leave headroom for compiler scratch / spills
    small_vmem = cap <= (80 << 20)    # v7x-like: 64 MiB per TensorCore, 2 TCs/chip
    return budget, small_vmem


# ----------------------------------------------------------------------------------
# Kernels
# ----------------------------------------------------------------------------------
def _kernel_resident(x_ref, w1t_ref, b1_ref, w2t_ref, b2_ref, o_ref):
    """Single hidden chunk: both weight matrices are VMEM-resident for the call.

    x_ref (tm,Sp), w1t_ref (Sp,Hp), b1_ref (1,Hp), w2t_ref (Hp,Sp), b2_ref (1,Sp).
    """
    h = jnp.dot(x_ref[...], w1t_ref[...], preferred_element_type=jnp.float32)
    h = jnp.maximum(h + b1_ref[...], 0.0)
    y = jnp.dot(h.astype(w2t_ref.dtype), w2t_ref[...],
                preferred_element_type=jnp.float32)
    o_ref[...] = (y + b2_ref[...]).astype(o_ref.dtype)


def _kernel_chunked_f32out(x_ref, w1t_ref, b1_ref, w2t_ref, b2_ref, o_ref):
    """Hidden-axis reduction accumulated directly into the resident f32 output block."""
    c = pl.program_id(1)

    @pl.when(c == 0)
    def _init():
        o_ref[...] = jnp.zeros_like(o_ref)

    h = jnp.dot(x_ref[...], w1t_ref[...], preferred_element_type=jnp.float32)
    h = jnp.maximum(h + b1_ref[...], 0.0)
    o_ref[...] += jnp.dot(h.astype(w2t_ref.dtype), w2t_ref[...],
                          preferred_element_type=jnp.float32)

    @pl.when(c == pl.num_programs(1) - 1)
    def _finalize():
        o_ref[...] += b2_ref[...]


def _kernel_chunked_acc(x_ref, w1t_ref, b1_ref, w2t_ref, b2_ref, o_ref, acc_ref):
    """Hidden-axis reduction into an f32 scratch accumulator (non-f32 outputs)."""
    c = pl.program_id(1)

    @pl.when(c == 0)
    def _init():
        acc_ref[...] = jnp.zeros_like(acc_ref)

    h = jnp.dot(x_ref[...], w1t_ref[...], preferred_element_type=jnp.float32)
    h = jnp.maximum(h + b1_ref[...], 0.0)
    acc_ref[...] += jnp.dot(h.astype(w2t_ref.dtype), w2t_ref[...],
                            preferred_element_type=jnp.float32)

    @pl.when(c == pl.num_programs(1) - 1)
    def _finalize():
        o_ref[...] = (acc_ref[...] + b2_ref[...]).astype(o_ref.dtype)


# ----------------------------------------------------------------------------------
# Parameter preparation (hoisted out of the per-call path)
# ----------------------------------------------------------------------------------
def prepare_params(w1, b1, w2, b2, compute_dtype=jnp.bfloat16):
    """Pre-transpose and zero-pad PyTorch nn.Linear params ONCE.

    w1: (H, S), b1: (H,), w2: (S, H), b2: (S,) with H = 16 * S.
    Returns lane-aligned arrays: w1t (Sp,Hp), b1 (1,Hp), w2t (Hp,Sp), b2 (1,Sp).
    Zero padding is mathematically exact: padded input features hit zero weight rows,
    padded hidden units have zero bias (ReLU(0)=0) and zero fc2 rows, padded outputs
    are sliced off by the wrapper.
    """
    H, S = w1.shape
    Sp = _round_up(S, 128)
    Hp = _round_up(H, 128)
    w1t = jnp.zeros((Sp, Hp), compute_dtype).at[:S, :H].set(w1.T.astype(compute_dtype))
    w2t = jnp.zeros((Hp, Sp), compute_dtype).at[:H, :S].set(w2.T.astype(compute_dtype))
    b1p = jnp.zeros((1, Hp), jnp.float32).at[0, :H].set(b1.astype(jnp.float32))
    b2p = jnp.zeros((1, Sp), jnp.float32).at[0, :S].set(b2.astype(jnp.float32))
    return w1t, b1p, w2t, b2p


# ----------------------------------------------------------------------------------
# Forward
# ----------------------------------------------------------------------------------
def classnet_forward(x, w1t, b1, w2t, b2, *, size, tm=None, th=None, vmem_budget=None):
    """x: (B, size) float; params from prepare_params. Returns (B, size) in x.dtype."""
    B = x.shape[0]
    Sp, Hp = w1t.shape
    cdt = w1t.dtype
    out_dtype = x.dtype
    itm = jnp.dtype(cdt).itemsize
    oit = jnp.dtype(out_dtype).itemsize

    budget, small_vmem = _vmem_budget()
    if vmem_budget is not None:
        budget = int(vmem_budget)

    # --- batch tile (sublane dim): multiple of 16, sized for arithmetic intensity ----
    if tm is None:
        tm_goal = 256 if small_vmem else 512
        tm = min(tm_goal, _round_up(B, 16))
        if small_vmem and B >= 32:
            # keep >= 2 batch tiles so the "parallel" axis shards across both v7x TCs
            tm = min(tm, _round_up(-(-B // 2), 16))
    tm = max(16, _round_up(int(tm), 16))
    Bp = _round_up(B, tm)
    n_bt = Bp // tm

    # --- hidden chunk: prefer fully resident weights (th = Hp), chunk only if needed -
    def _working_set(th_):
        return (2 * Sp * th_ * itm + 2 * th_ * Sp * itm   # w1t / w2t (2 pipeline bufs)
                + 2 * tm * Sp * itm + 2 * tm * Sp * oit   # x / out tiles (double buf)
                + tm * th_ * 4                            # f32 hidden temp
                + tm * Sp * 4                             # f32 accumulator / output
                + 2 * (th_ + Sp) * 4)                     # biases

    if th is None:
        if _working_set(Hp) <= budget:
            th = Hp
        else:
            mult = 256 if Hp % 256 == 0 else 128
            th = mult
            t = mult
            while t < Hp:
                if Hp % t == 0 and _working_set(t) <= budget:
                    th = t
                t += mult
    th = int(th)
    assert Hp % th == 0, "hidden chunk must divide padded hidden size"
    n_hc = Hp // th
    resident = (n_hc == 1)

    # --- pad x only when actually needed (single jnp.pad, no zeros+set round trip) ---
    xc = x.astype(cdt)
    need_pad = (Bp != B) or (Sp != size)
    xp = jnp.pad(xc, ((0, Bp - B), (0, Sp - size))) if need_pad else xc

    # --- VMEM limit (always set; generation-aware cap) --------------------------------
    vmem_est = _working_set(th)
    vmem_limit = int(min(budget,
                         max(32 << 20, _round_up(vmem_est * 3 // 2, 1 << 20))))

    # --- advisory cost estimate --------------------------------------------------------
    weight_bytes = 2 * Sp * Hp * itm
    weight_passes = 1 if resident else n_bt
    bytes_accessed = int(Bp * Sp * itm + weight_passes * weight_bytes
                         + (Hp + Sp) * 4 + Bp * Sp * oit)
    cost = pl.CostEstimate(flops=4 * Bp * Sp * Hp, transcendentals=0,
                           bytes_accessed=bytes_accessed)

    if resident:
        grid = (n_bt,)
        in_specs = [
            pl.BlockSpec((tm, Sp), lambda i: (i, 0)),     # x: tiled over batch
            pl.BlockSpec((Sp, Hp), lambda i: (0, 0)),     # w1t: resident
            pl.BlockSpec((1, Hp), lambda i: (0, 0)),      # b1:  resident
            pl.BlockSpec((Hp, Sp), lambda i: (0, 0)),     # w2t: resident
            pl.BlockSpec((1, Sp), lambda i: (0, 0)),      # b2:  resident
        ]
        out_specs = pl.BlockSpec((tm, Sp), lambda i: (i, 0))
        kernel = _kernel_resident
        scratch = []
        dims = ("parallel",)
    else:
        grid = (n_bt, n_hc)
        in_specs = [
            pl.BlockSpec((tm, Sp), lambda i, c: (i, 0)),  # x: tiled over batch
            pl.BlockSpec((Sp, th), lambda i, c: (0, c)),  # w1t: chunked over hidden
            pl.BlockSpec((1, th), lambda i, c: (0, c)),   # b1 chunk
            pl.BlockSpec((th, Sp), lambda i, c: (c, 0)),  # w2t: chunked over hidden
            pl.BlockSpec((1, Sp), lambda i, c: (0, 0)),   # b2: resident
        ]
        out_specs = pl.BlockSpec((tm, Sp), lambda i, c: (i, 0))
        if out_dtype == jnp.float32:
            kernel = _kernel_chunked_f32out
            scratch = []
        else:
            kernel = _kernel_chunked_acc
            scratch = [pltpu.VMEM((tm, Sp), jnp.float32)]
        dims = ("parallel", "arbitrary")

    out_padded = pl.pallas_call(
        kernel,
        out_shape=jax.ShapeDtypeStruct((Bp, Sp), out_dtype),
        grid_spec=pltpu.PrefetchScalarGridSpec(
            num_scalar_prefetch=0,
            grid=grid,
            in_specs=in_specs,
            out_specs=out_specs,
            scratch_shapes=scratch,
        ),
        compiler_params=pltpu.CompilerParams(
            dimension_semantics=dims,
            vmem_limit_bytes=vmem_limit,
        ),
        cost_estimate=cost,
    )(xp, w1t, b1, w2t, b2)

    if need_pad:
        return out_padded[:B, :size]
    return out_padded


# ----------------------------------------------------------------------------------
# Init + self-test
# ----------------------------------------------------------------------------------
def init_params(key, size=1):
    """nn.Linear-style init: U(-1/sqrt(fan_in), 1/sqrt(fan_in))."""
    hidden = 16 * size
    k1, k2, k3, k4 = jax.random.split(key, 4)
    bound1 = 1.0 / jnp.sqrt(jnp.float32(size))
    bound2 = 1.0 / jnp.sqrt(jnp.float32(hidden))
    w1 = jax.random.uniform(k1, (hidden, size), jnp.float32, -bound1, bound1)
    b1 = jax.random.uniform(k2, (hidden,), jnp.float32, -bound1, bound1)
    w2 = jax.random.uniform(k3, (size, hidden), jnp.float32, -bound2, bound2)
    b2 = jax.random.uniform(k4, (size,), jnp.float32, -bound2, bound2)
    return w1, b1, w2, b2


def _ref_forward(x, w1, b1, w2, b2):
    return jnp.maximum(x @ w1.T + b1, 0.0) @ w2.T + b2


if __name__ == "__main__":
    key = jax.random.PRNGKey(0)
    kx, kp = jax.random.split(key)

    # --- test 1: the module's own setting (size=1, 100 points on [-3.14, 3.14]),
    #             f32 compute, resident-weights path, tight tolerance ------------------
    size, batch = 1, 100
    x = jnp.linspace(-3.14, 3.14, batch, dtype=jnp.float32).reshape(batch, size)
    w1, b1, w2, b2 = init_params(kp, size)
    ref = _ref_forward(x, w1, b1, w2, b2)

    params_f32 = prepare_params(w1, b1, w2, b2, compute_dtype=jnp.float32)
    out = jax.block_until_ready(classnet_forward(x, *params_f32, size=size))
    assert out.shape == (batch, size)
    assert jnp.allclose(out, ref, atol=1e-5), "f32 resident mismatch vs reference"

    # --- test 2: default bf16 weights (f32 accumulation), resident path ---------------
    params_bf16 = prepare_params(w1, b1, w2, b2)          # default compute = bfloat16
    out_bf16 = jax.block_until_ready(classnet_forward(x, *params_bf16, size=size))
    assert jnp.allclose(out_bf16, ref, atol=5e-2, rtol=5e-2), "bf16 mismatch vs reference"

    # --- test 3a: forced hidden chunking, f32 output -> direct-output accumulation ----
    size3, batch3 = 16, 40                                # hidden = 256 -> 2 chunks of 128
    kx3, kp3 = jax.random.split(jax.random.PRNGKey(0), 2)
    x3 = jax.random.uniform(kx3, (batch3, size3), jnp.float32, -3.14, 3.14)
    w1c, b1c, w2c, b2c = init_params(kp3, size3)
    ref3 = _ref_forward(x3, w1c, b1c, w2c, b2c)

    p3 = prepare_params(w1c, b1c, w2c, b2c, compute_dtype=jnp.float32)
    out3 = jax.block_until_ready(
        classnet_forward(x3, *p3, size=size3, tm=16, th=128))
    assert out3.shape == (batch3, size3)
    assert jnp.allclose(out3, ref3, atol=1e-4), "chunked f32-out mismatch vs reference"

    # --- test 3b: forced chunking with bf16 output -> scratch-accumulator kernel ------
    p3b = prepare_params(w1c, b1c, w2c, b2c, compute_dtype=jnp.bfloat16)
    x3b = x3.astype(jnp.bfloat16)
    out3b = jax.block_until_ready(
        classnet_forward(x3b, *p3b, size=size3, tm=16, th=128))
    ref3b = _ref_forward(x3b.astype(jnp.float32), w1c, b1c, w2c, b2c)
    assert jnp.allclose(out3b.astype(jnp.float32), ref3b, atol=1e-1, rtol=1e-1), \
        "chunked bf16-out mismatch vs reference"

    print("KERNEL_OK")
</pallas_src>

<mosaic_0001>
module attributes {stable_mosaic.version = 11 : i64} {
  func.func @_kernel_resident(%arg0: i32, %arg1: memref<64x128xf32, #tpu.memory_space<vmem>>, %arg2: memref<128x128xf32, #tpu.memory_space<vmem>>, %arg3: memref<1x128xf32, #tpu.memory_space<vmem>>, %arg4: memref<128x128xf32, #tpu.memory_space<vmem>>, %arg5: memref<1x128xf32, #tpu.memory_space<vmem>>, %arg6: memref<64x128xf32, #tpu.memory_space<vmem>>) attributes {dimension_semantics = [#tpu.dimension_semantics<parallel>], iteration_bounds = array<i64: 2>, scalar_prefetch = 0 : i64, scratch_operands = 0 : i64, tpu.core_type = #tpu.core_type<tc>, window_params = [{transform_indices = @transform_0, window_bounds = array<i64: 64, 128>}, {pipeline_mode = #tpu.pipeline_mode<synchronous>, transform_indices = @transform_1, window_bounds = array<i64: 128, 128>}, {pipeline_mode = #tpu.pipeline_mode<synchronous>, transform_indices = @transform_2, window_bounds = array<i64: 1, 128>}, {pipeline_mode = #tpu.pipeline_mode<synchronous>, transform_indices = @transform_3, window_bounds = array<i64: 128, 128>}, {pipeline_mode = #tpu.pipeline_mode<synchronous>, transform_indices = @transform_4, window_bounds = array<i64: 1, 128>}, {transform_indices = @transform_5, window_bounds = array<i64: 64, 128>}]} {
    %c0 = arith.constant 0 : index
    %c0_0 = arith.constant 0 : index
    %0 = vector.load %arg1[%c0, %c0_0] : memref<64x128xf32, #tpu.memory_space<vmem>>, vector<64x128xf32>
    %c0_1 = arith.constant 0 : index
    %c0_2 = arith.constant 0 : index
    %1 = vector.load %arg2[%c0_1, %c0_2] : memref<128x128xf32, #tpu.memory_space<vmem>>, vector<128x128xf32>
    %cst = arith.constant dense<0.000000e+00> : vector<64x128xf32>
    %2 = tpu.matmul %0, %1, %cst {dimension_numbers = #tpu.dot_dimension_numbers<[1], [0], [0], [1], [0, 0, 1, 1], [], []>} : vector<64x128xf32>, vector<128x128xf32>, vector<64x128xf32> -> vector<64x128xf32>
    %c0_3 = arith.constant 0 : index
    %c0_4 = arith.constant 0 : index
    %3 = vector.load %arg3[%c0_3, %c0_4] : memref<1x128xf32, #tpu.memory_space<vmem>>, vector<1x128xf32>
    %4 = vector.broadcast %3 : vector<1x128xf32> to vector<64x128xf32>
    %5 = arith.addf %2, %4 : vector<64x128xf32>
    %cst_5 = arith.constant 0.000000e+00 : f32
    %6 = vector.broadcast %cst_5 : f32 to vector<64x128xf32>
    %7 = arith.maximumf %5, %6 : vector<64x128xf32>
    %c0_6 = arith.constant 0 : index
    %c0_7 = arith.constant 0 : index
    %8 = vector.load %arg4[%c0_6, %c0_7] : memref<128x128xf32, #tpu.memory_space<vmem>>, vector<128x128xf32>
    %cst_8 = arith.constant dense<0.000000e+00> : vector<64x128xf32>
    %9 = tpu.matmul %7, %8, %cst_8 {dimension_numbers = #tpu.dot_dimension_numbers<[1], [0], [0], [1], [0, 0, 1, 1], [], []>} : vector<64x128xf32>, vector<128x128xf32>, vector<64x128xf32> -> vector<64x128xf32>
    %c0_9 = arith.constant 0 : index
    %c0_10 = arith.constant 0 : index
    %10 = vector.load %arg5[%c0_9, %c0_10] : memref<1x128xf32, #tpu.memory_space<vmem>>, vector<1x128xf32>
    %11 = vector.broadcast %10 : vector<1x128xf32> to vector<64x128xf32>
    %12 = arith.addf %9, %11 : vector<64x128xf32>
    %c0_11 = arith.constant 0 : index
    %c0_12 = arith.constant 0 : index
    %13 = vector.load %arg6[%c0_11, %c0_12] : memref<64x128xf32, #tpu.memory_space<vmem>>, vector<64x128xf32>
    tpu.vector_store %arg6[%c0_11, %c0_12], %12 {strides = array<i32>} : memref<64x128xf32, #tpu.memory_space<vmem>>, vector<64x128xf32>,
    return
  }
  func.func @transform_0(%arg0: i32) -> (i32, i32) {
    %c0_i32 = arith.constant 0 : i32
    %c0_i32_0 = arith.constant 0 : i32
    return %arg0, %c0_i32 : i32, i32
  }
  func.func @transform_1(%arg0: i32) -> (i32, i32) {
    %c0_i32 = arith.constant 0 : i32
    %c0_i32_0 = arith.constant 0 : i32
    %c0_i32_1 = arith.constant 0 : i32
    return %c0_i32, %c0_i32_0 : i32, i32
  }
  func.func @transform_2(%arg0: i32) -> (i32, i32) {
    %c0_i32 = arith.constant 0 : i32
    %c0_i32_0 = arith.constant 0 : i32
    %c0_i32_1 = arith.constant 0 : i32
    return %c0_i32, %c0_i32_0 : i32, i32
  }
  func.func @transform_3(%arg0: i32) -> (i32, i32) {
    %c0_i32 = arith.constant 0 : i32
    %c0_i32_0 = arith.constant 0 : i32
    %c0_i32_1 = arith.constant 0 : i32
    return %c0_i32, %c0_i32_0 : i32, i32
  }
  func.func @transform_4(%arg0: i32) -> (i32, i32) {
    %c0_i32 = arith.constant 0 : i32
    %c0_i32_0 = arith.constant 0 : i32
    %c0_i32_1 = arith.constant 0 : i32
    return %c0_i32, %c0_i32_0 : i32, i32
  }
  func.func @transform_5(%arg0: i32) -> (i32, i32) {
    %c0_i32 = arith.constant 0 : i32
    %c0_i32_0 = arith.constant 0 : i32
    return %arg0, %c0_i32 : i32, i32
  }
}

</mosaic_0001>

<bundles_post_ra>
// kernel: tpu_custom_call.1
= control target key start
LH: loop header
LB: loop body
LE: loop exit
PB: predicated region body
PF: predicated region fallthrough
CT: control target
= control target key end

     0   :  { %10 = vsyncpa [#allocation3], 0  ;;  %s1412_s0 = inlined_call_operand.hbm [shape: f32[128,128], index: 0, kind: input, shape index: {}]   ;;  %s1413_s1 = inlined_call_operand.hbm [shape: f32[128,128], index: 1, kind: input, shape index: {}]   ;;  %s1414_s2 = inlined_call_operand.vmem [shape: f32[1,128], index: 2, kind: input, shape index: {}]   ;;  %s1415_s3 = inlined_call_operand.hbm [shape: f32[128,128], index: 3, kind: input, shape index: {}]   ;;  %s1416_s4 = inlined_call_operand.vmem [shape: f32[1,128], index: 4, kind: input, shape index: {}]   ;;  %s1417_s5 = inlined_call_operand.hbm [shape: f32[128,128], index: 5, kind: output, shape index: {}]  }
   0x1   :  { %12 = vsyncpa [#allocation3 + $0x1], 0 }
   0x2   :  { %13 = vsyncpa [#allocation6], 0 }
   0x3   :  { %14 = vsyncpa [#allocation4], 0 }
   0x4   :  { %16 = vsyncpa [#allocation4 + $0x1], 0  ;;  %s1149_s18 = smov 0   ;;  %s1151_s19 = smov 0  }
   0x5   :  { %s1153_s20 = smov 0   ;;  %s1155_s21 = smov 0  }
   0x6 LB: > { %s1170_s22 = sadd.s32 4294967295, %s1109_s21   ;;  %s660_s23 = sadd.s32 4294967294, %s1109_s21   ;;  %s1109_s21 = sphi %s1155_s21, %s1437_s21   ;;  %s1105_s20 = sphi %s1153_s20, %s1436_s20   ;;  %s1101_s19 = sphi %s1151_s19, %s1435_s19   ;;  %s1097_s18 = sphi %s1149_s18, %s1434_s18  }
   0x7   : > { %p42_p0 = scmp.ne.s32.totalorder %s1101_s19, %s1097_s18  ;;  %p1418_p1 = scmp.eq.s32.totalorder %s1170_s22, 0 }
   0x8   : > { %p156_p3 = scmp.eq.s32.totalorder %s660_s23, 1  ;;  %p661_p5 = scmp.ge.s32.totalorder %s1109_s21, 1 }
   0x9   : > { %p1179_p4 = por %p1418_p1, %p42_p0  ;;  %p163_p7 = scmp.lt.s32.totalorder %s1109_s21, 3 }
   0xa   : > { %p1184_p6 = por %p156_p3, %p42_p0  ;;  %s1111_s27 = smov [#allocation5]  }
   0xb   : > { %s1421_s24 = scalar_select %p1179_p4, 1, 0 }
   0xc   : > { %s1422_s25 = scalar_select %p1184_p6, 1, 0 }
   0xd   : > { %p1189_p8 = pnand %p661_p5, %p163_p7  ;;  %s175_s28 = sshll.u32 %s1111_s27, 4  ;;  %s1193_s28 = int_to_ptr.vmem [resolvable:$true] %s175_s28 }
   0xe   : > { %s1112_s30 = smov [#allocation7]   ;;  %s953_s9 = scalar_lea.hbm %s1413_s1, 2048 }
   0xf   : > { %p894_p9 = pneg %p1189_p8  ;;  %s191_s6 = sshll.u32 %s1112_s30, 4  ;;  %s1204_s6 = int_to_ptr.vmem [resolvable:$true] %s191_s6 }
  0x10   : > { %p954_p12 = scmp.ne.s32.totalorder %s1413_s1, %s953_s9  ;;  %p960_p5 = scmp.lt.u32.totalorder %s953_s9, %s1413_s1 }
  0x11   : > { %p1200_p11 = pnand %p894_p9, %p1418_p1 }
  0x13   : > { %p955_p13 = pneg %p1200_p11 }
  0x15   : > { %p956_p0 = pnand %p955_p13, %p954_p12 }
  0x17   : > { %p957_p3 = pneg %p956_p0 }
  0x19   : > { %p962_p7 = pnand %p960_p5, %p957_p3 }
  0x1b   : > { %965 = shalt.err (!%p962_p7)
}
  0x1c   : > { %s966_s14 = scalar_lea.vmem %s1193_s28, 2048  ;;  %p974_p2 = scmp.lt.s32.totalorder %s1193_s28, %s1193_s28 }
  0x1d   : > { %p967_p9 = scmp.ne.s32.totalorder %s1193_s28, %s966_s14  ;;  %p975_p12 = scmp.lt.s32.totalorder %s966_s14, %s966_s14 }
  0x1f   : > { %p969_p10 = pnand %p967_p9, %p955_p13  ;;  %p976_p0 = por %p975_p12, %p974_p2 }
  0x21   : > { %p970_p1 = pneg %p969_p10 }
  0x23   : > { %p977_p6 = pnand %p976_p0, %p970_p1 }
  0x25   : > { %980 = shalt.err (!%p977_p6)
}
  0x26   : > { %s1113_s15 = smov 128   ;;  %s1114_s16 = smov 8  }
  0x27   : > { %897 = dma.hbm_to_vmem [thread:$0]  (!%p1200_p11), %s1413_s1, 2048, %s1193_s28, [#allocation6], %s1113_s15, %s1113_s15, %s1114_s16  }
  0x28   : > { %s981_s7 = scalar_lea.hbm %s1415_s3, 2048 }
  0x29   : > { %p982_p1 = scmp.ne.s32.totalorder %s1415_s3, %s981_s7  ;;  %p988_p10 = scmp.lt.u32.totalorder %s981_s7, %s1415_s3 }
  0x2b   : > { %p984_p2 = pnand %p982_p1, %p955_p13 }
  0x2d   : > { %p985_p6 = pneg %p984_p2 }
  0x2f   : > { %p990_p3 = pnand %p988_p10, %p985_p6 }
  0x31   : > { %993 = shalt.err (!%p990_p3)
}
  0x32   : > { %s994_s28 = scalar_lea.vmem %s1204_s6, 2048  ;;  %p1002_p12 = scmp.lt.s32.totalorder %s1204_s6, %s1204_s6 }
  0x33   : > { %p995_p5 = scmp.ne.s32.totalorder %s1204_s6, %s994_s28  ;;  %p1003_p0 = scmp.lt.s32.totalorder %s994_s28, %s994_s28 }
  0x35   : > { %p997_p7 = pnand %p995_p5, %p955_p13  ;;  %p1004_p1 = por %p1003_p0, %p1002_p12 }
  0x37   : > { %p998_p9 = pneg %p997_p7 }
  0x39   : > { %p1005_p2 = pnand %p1004_p1, %p998_p9 }
  0x3b   : > { %1008 = shalt.err (!%p1005_p2)
}
  0x3c   : > { %900 = dma.hbm_to_vmem [thread:$0]  (!%p1200_p11), %s1415_s3, 2048, %s1204_s6, [#allocation6], %s1113_s15, %s1113_s15, %s1114_s16  }
  0x3d   : > { %s1265_s29 = sadd.s32 1, %s1109_s21   ;;  %s29_s14 = sadd.s32 1, %s1105_s20 }
  0x3e   : > { %s26_s17 = ssub.s32 %s1109_s21, %s1265_s29  ;;  %p36_p13 = scmp.ne.s32.totalorder %s1105_s20, %s1101_s19 }
  0x3f   : > { %p27_p6 = scmp.eq.s32.totalorder %s26_s17, 0  ;;  %p37_p10 = scmp.eq.s32.totalorder %s1109_s21, 0 }
  0x40   : > { %p1425_p3 = scmp.eq.s32.totalorder %s1170_s22, 1  ;;  %p911_p7 = scmp.lt.s32.totalorder %s1109_s21, 2 }
  0x41   : > { %s1281_s27 = scalar_select %p27_p6, %s1105_s20, %s29_s14  }
  0x42   : > { %p1275_p5 = por %p1425_p3, %p36_p13  ;;  %p38_p9 = por %p37_p10, %p36_p13 }
  0x43   : > { %s208_s30 = sand.u32 1, %s1105_s20   ;;  %s680_s6 = sshll.u32 %s1109_s21, 10 }
  0x44   : > { %s1426_s23 = scalar_select %p1275_p5, 1, 0 }
  0x45   : > { %s665_s7 = sshll.u32 %s208_s30, 6  ;;  %s1288_s10 = scalar_lea.hbm %s1412_s0, %s680_s6 }
  0x46   : > { %s212_s11 = scalar_lea.vmem [#allocation2], %s665_s7  ;;  %p1292_p11 = pnand %p911_p7, %p38_p9 }
  0x47   : > { %s219_s28 = sshll.u32 %s212_s11, 4  ;;  %s1296_s13 = scalar_lea.sflag [#allocation3], %s208_s30  ;;  %s1290_s28 = int_to_ptr.vmem [resolvable:$true] %s219_s28 }
  0x48   : > { %s1009_s14 = scalar_lea.hbm %s1288_s10, 1024  ;;  %p1011_p0 = pneg %p1292_p11 }
  0x49   : > { %p1010_p12 = scmp.ne.s32.totalorder %s1288_s10, %s1009_s14  ;;  %s1014_s6 = scalar_lea.hbm %s1412_s0, 2048 }
  0x4a   : > { %p1015_p13 = scmp.lt.u32.totalorder %s1288_s10, %s1412_s0  ;;  %p1016_p6 = scmp.lt.u32.totalorder %s1014_s6, %s1009_s14 }
  0x4b   : > { %p1012_p1 = pnand %p1011_p0, %p1010_p12  ;;  %p1018_p3 = scmp.lt.u32.totalorder %s1009_s14, %s1288_s10 }
  0x4c   : > { %p1017_p10 = por %p1016_p6, %p1015_p13 }
  0x4d   : > { %p1013_p2 = pneg %p1012_p1 }
  0x4e   : > { %p1019_p7 = por %p1018_p3, %p1017_p10 }
  0x50   : > { %p1020_p9 = pnand %p1019_p7, %p1013_p2 }
  0x52   : > { %1023 = shalt.err (!%p1020_p9)
}
  0x53   : > { %s1024_s30 = scalar_lea.vmem %s1290_s28, 1024  ;;  %s1115_s11 = smov [#allocation2]  }
  0x54   : > { %p1025_p12 = scmp.ne.s32.totalorder %s1290_s28, %s1024_s30  ;;  %s1029_s17 = sshll.u32 %s1115_s11, 4  ;;  %s1030_s17 = int_to_ptr.vmem [resolvable:$false] %s1029_s17 }
  0x55   : > { %s1031_s7 = scalar_lea.vmem %s1030_s17, 2048  ;;  %p1032_p4 = scmp.lt.s32.totalorder %s1290_s28, %s1030_s17 }
  0x56   : > { %p1027_p1 = pnand %p1025_p12, %p1011_p0  ;;  %p1033_p13 = scmp.lt.s32.totalorder %s1031_s7, %s1024_s30 }
  0x58   : > { %p1028_p5 = pneg %p1027_p1  ;;  %p1034_p6 = por %p1033_p13, %p1032_p4 }
  0x5a   : > { %p1035_p10 = pnand %p1034_p6, %p1028_p5 }
  0x5c   : > { %1038 = shalt.err (!%p1035_p10)
}
  0x5d   : > { %904 = dma.hbm_to_vmem [thread:$0]  (!%p1292_p11), %s1288_s10, 1024, %s1290_s28, %s1296_s13, %s1113_s15, %s1113_s15, %s1114_s16  }
  0x5e   : > { %231 = sbr.rel (%p1189_p8) target bundleno = 600 (0x258), region = 40  ;;  %s1330_s14 = sand.u32 (!%p1189_p8), 1, %s1101_s19  }
  0x5f   : > { %s669_s6 = sshll.u32 (!%p1189_p8), %s1330_s14, 6  ;;  %s234_s8 = scalar_lea.sflag (!%p1189_p8), [#allocation3], %s1330_s14 }
  0x60   : > { %s1336_s12 = scalar_lea.vmem (!%p1189_p8), [#allocation2], %s669_s6  ;;  %p1428_p4 = scmp.ne.s32.totalorder (!%p1189_p8), %s1421_s24, 0 }
  0x65   : > { %1084 = dma.done.wait (%p1428_p4), %s234_s8, 1024  }
  0x66   : > { %1086 = vsyncadd (%p1428_p4), %s234_s8, 4294966272  ;;  %p1429_p5 = scmp.eq.s32.totalorder %s1170_s22, 0 }
  0x68   : > { %1088 = dma.done.wait (%p1429_p5), [#allocation6], 4096   ;;  %p1430_p8 = pmov %p1429_p5 }
  0x69   : > { %v282_v0 = vld [vmem:[#allocation5] sm:$0xff]  ;;  %v283_v1 = vld [vmem:[#allocation5 + $0x8] sm:$0xff]  ;;  %v284_v2 = vld [vmem:[#allocation5 + $0x10] sm:$0xff]  ;;  %s271_s10 = scalar_lea.vmem [#allocation8], %s669_s6  ;;  %s681_s13 = sshll.u32 %s1170_s22, 10 }
  0x6a   : > { %1090 = vsyncadd (%p1430_p8), [#allocation6], 4294963200  ;;  %v818_v3 = vpack.c.bf16 %v283_v1, %v282_v0  ;;  %v285_v4 = vld [vmem:[#allocation5 + $0x18] sm:$0xff]  ;;  %v286_v6 = vld [vmem:[#allocation5 + $0x20] sm:$0xff]  ;;  %s568_s28 = sshll.u32 %s271_s10, 4  ;;  %s1368_s11 = scalar_lea.hbm %s1417_s5, %s681_s13  ;;  %s1363_s28 = int_to_ptr.vmem [resolvable:$true] %s568_s28 }
  0x6b   : > { %v822_v5 = vpack.c.bf16 %v285_v4, %v284_v2  ;;  %v287_v7 = vld [vmem:[#allocation5 + $0x28] sm:$0xff]  ;;  %v274_v9 = vld [vmem:[%s1336_s12] sm:$0xff]  ;;  %v288_v10 = vld [vmem:[#allocation5 + $0x30] sm:$0xff]  ;;  %s555_s17 = scalar_lea.sflag [#allocation4], %s1330_s14  ;;  %s1039_s22 = scalar_lea.vmem %s1363_s28, 1024 }
  0x6c   : > { %819 = vmatprep.subr.bf16.mxu0 %v818_v3  ;;  %v826_v8 = vpack.c.bf16 %v287_v7, %v286_v6  ;;  %v289_v11 = vld [vmem:[#allocation5 + $0x38] sm:$0xff]  ;;  %762 = vmatprep.mubr.f32.mxu0 %v274_v9  ;;  %v418_v12 = vld [vmem:[#allocation7] sm:$0xff]  ;;  %v419_v13 = vld [vmem:[#allocation7 + $0x8] sm:$0xff]  ;;  %p1040_p11 = scmp.ne.s32.totalorder %s1363_s28, %s1039_s22  ;;  %p1431_p0 = scmp.ne.s32.totalorder %s1426_s23, 0 }
  0x6d   : > { %821 = vmatpush3.bf16.msra.mxu0 %v818_v3  ;;  %v420_v14 = vld [vmem:[#allocation7 + $0x10] sm:$0xff]  ;;  %v830_v15 = vpack.c.bf16 %v289_v11, %v288_v10  ;;  %v290_v16 = vld [vmem:[#allocation5 + $0x40] sm:$0xff]  ;;  %v850_v17 = vpack.c.bf16 %v419_v13, %v418_v12  ;;  %v421_v18 = vld [vmem:[#allocation7 + $0x18] sm:$0xff]  ;;  %s1116_s7 = smov [#allocation8]  }
  0x6e   : > { %823 = vmatprep.subr.bf16.mxu0 %v822_v5  ;;  %v291_v19 = vld [vmem:[#allocation5 + $0x48] sm:$0xff]  ;;  %v854_v20 = vpack.c.bf16 %v421_v18, %v420_v14  ;;  %v422_v21 = vld [vmem:[#allocation7 + $0x20] sm:$0xff]  ;;  %v292_v24 = vld [vmem:[#allocation5 + $0x50] sm:$0xff]  ;;  %p1041_p2 = pnand %p1040_p11, %p1431_p0  ;;  %s1043_s6 = sshll.u32 %s1116_s7, 4  ;;  %s1044_s6 = int_to_ptr.vmem [resolvable:$false] %s1043_s6 }
  0x6f   : > { %v423_v22 = vld [vmem:[#allocation7 + $0x28] sm:$0xff]  ;;  %851 = vmatprep.subr.bf16.mxu1 %v850_v17  ;;  %v834_v23 = vpack.c.bf16 %v291_v19, %v290_v16  ;;  %v293_v26 = vld [vmem:[#allocation5 + $0x58] sm:$0xff]  ;;  %v424_v27 = vld [vmem:[#allocation7 + $0x30] sm:$0xff]  ;;  %s1045_s8 = scalar_lea.vmem %s1044_s6, 2048  ;;  %p1046_p7 = scmp.lt.s32.totalorder %s1363_s28, %s1044_s6 }
  0x70   : > { %853 = vmatpush3.bf16.msra.mxu1 %v850_v17  ;;  %v858_v25 = vpack.c.bf16 %v423_v22, %v422_v21  ;;  %v425_v28 = vld [vmem:[#allocation7 + $0x38] sm:$0xff]  ;;  %v838_v29 = vpack.c.bf16 %v293_v26, %v292_v24  ;;  %v294_v30 = vld [vmem:[#allocation5 + $0x60] sm:$0xff]  ;;  %v295_v32 = vld [vmem:[#allocation5 + $0x68] sm:$0xff]  ;;  %p1042_p3 = pneg %p1041_p2  ;;  %p1047_p9 = scmp.lt.s32.totalorder %s1045_s8, %s1039_s22 }
  0x71   : > { %825 = vmatpush3.bf16.msra.mxu0 %v822_v5  ;;  %855 = vmatprep.subr.bf16.mxu1 %v854_v20  ;;  %v862_v31 = vpack.c.bf16 %v425_v28, %v424_v27  ;;  %v426_v33 = vld [vmem:[#allocation7 + $0x40] sm:$0xff]  ;;  %v427_v34 = vld [vmem:[#allocation7 + $0x48] sm:$0xff]  ;;  %v842_v35 = vpack.c.bf16 %v295_v32, %v294_v30  ;;  %v296_v36 = vld [vmem:[#allocation5 + $0x70] sm:$0xff] }
  0x72   : > { %827 = vmatprep.subr.bf16.mxu0 %v826_v8  ;;  %v866_v37 = vpack.c.bf16 %v427_v34, %v426_v33  ;;  %v297_v38 = vld [vmem:[#allocation5 + $0x78] sm:$0xff]  ;;  %v428_v39 = vld [vmem:[#allocation7 + $0x50] sm:$0xff]  ;;  %v430_v43 = vld [vmem:[#allocation7 + $0x60] sm:$0xff]  ;;  %p1048_p12 = por %p1047_p9, %p1046_p7 }
  0x73   : > { %v429_v40 = vld [vmem:[#allocation7 + $0x58] sm:$0xff]  ;;  %v846_v41 = vpack.c.bf16 %v297_v38, %v296_v36  ;;  %v431_v44 = vld [vmem:[#allocation7 + $0x68] sm:$0xff]  ;;  %v276_v47 = vld [vmem:[%s1336_s12 + $0x10] sm:$0xff] }
  0x74   : > { %857 = vmatpush3.bf16.msra.mxu1 %v854_v20  ;;  %v870_v42 = vpack.c.bf16 %v429_v40, %v428_v39  ;;  %v874_v45 = vpack.c.bf16 %v431_v44, %v430_v43  ;;  %v275_v46 = vld [vmem:[%s1336_s12 + $0x8] sm:$0xff]  ;;  %v277_v48 = vld [vmem:[%s1336_s12 + $0x18] sm:$0xff]  ;;  %v278_v49 = vld [vmem:[%s1336_s12 + $0x20] sm:$0xff]  ;;  %p1049_p1 = pnand %p1048_p12, %p1042_p3 }
  0x75   : > { %829 = vmatpush3.bf16.msra.mxu0 %v826_v8  ;;  %859 = vmatprep.subr.bf16.mxu1 %v858_v25  ;;  %v279_v50 = vld [vmem:[%s1336_s12 + $0x28] sm:$0xff]  ;;  %v280_v51 = vld [vmem:[%s1336_s12 + $0x30] sm:$0xff]  ;;  %v281_v52 = vld [vmem:[%s1336_s12 + $0x38] sm:$0xff] }
  0x76   : > { %831 = vmatprep.subr.bf16.mxu0 %v830_v15  ;;  %v432_v53 = vld [vmem:[#allocation7 + $0x70] sm:$0xff]  ;;  %v433_v54 = vld [vmem:[#allocation7 + $0x78] sm:$0xff]  ;;  %v673_v56 = vld [vmem:[%s1414_s2] ss:$0 sm:$0xff] }
  0x77   : > { %v878_v55 = vpack.c.bf16 %v433_v54, %v432_v53  ;;  %v674_v17 = vld [vmem:[%s1416_s4] ss:$0 sm:$0xff] }
  0x78   : > { %861 = vmatpush3.bf16.msra.mxu1 %v858_v25 }
  0x79   : > { %833 = vmatpush3.bf16.msra.mxu0 %v830_v15  ;;  %863 = vmatprep.subr.bf16.mxu1 %v862_v31 }
  0x7a   : > { %835 = vmatprep.subr.bf16.mxu0 %v834_v23 }
  0x7c   : > { %865 = vmatpush3.bf16.msra.mxu1 %v862_v31 }
  0x7d   : > { %837 = vmatpush3.bf16.msra.mxu0 %v834_v23  ;;  %867 = vmatprep.subr.bf16.mxu1 %v866_v37 }
  0x7e   : > { %839 = vmatprep.subr.bf16.mxu0 %v838_v29 }
  0x80   : > { %869 = vmatpush3.bf16.msra.mxu1 %v866_v37 }
  0x81   : > { %841 = vmatpush3.bf16.msra.mxu0 %v838_v29  ;;  %871 = vmatprep.subr.bf16.mxu1 %v870_v42 }
  0x82   : > { %843 = vmatprep.subr.bf16.mxu0 %v842_v35 }
  0x84   : > { %873 = vmatpush3.bf16.msra.mxu1 %v870_v42 }
  0x85   : > { %845 = vmatpush3.bf16.msra.mxu0 %v842_v35  ;;  %875 = vmatprep.subr.bf16.mxu1 %v874_v45 }
  0x86   : > { %847 = vmatprep.subr.bf16.mxu0 %v846_v41 }
  0x88   : > { %877 = vmatpush3.bf16.msra.mxu1 %v874_v45 }
  0x89   : > { %849 = vmatpush3.bf16.msra.mxu0 %v846_v41  ;;  %879 = vmatprep.subr.bf16.mxu1 %v878_v55 }
  0x8c   : > { %763 = vmatmul.mubr.f32.vlgmr.msra.gmra.mrb[0].mxu0 %v275_v46  ;;  %881 = vmatpush3.bf16.msra.mxu1 %v878_v55 }
  0x8d   : > { %765 = vmatprep.mubr.f32.mxu0 %v276_v47 }
  0x90   : > { %766 = vmatmul.mubr.f32.gmra.mrb[2].mxu0 %v277_v48 }
  0x91   : > { %768 = vmatprep.mubr.f32.mxu0 %v278_v49 }
  0x94   : > { %769 = vmatmul.mubr.f32.gmra.mrb[4].mxu0 %v279_v50 }
  0x95   : > { %771 = vmatprep.mubr.f32.mxu0 %v280_v51 }
  0x98   : > { %772 = vmatmul.mubr.f32.gmra.mrb[6].mxu0 %v281_v52 }
 0x15f   : > { %v764_v57 = vpop.f32.mrb[0].mxu0 }
 0x160   : > { %v377_v58 = vadd.f32 %v764_v57, %v673_v56  ;;  %v371_v59 = vpop.f32.mrb[1].mxu0 }
 0x161   : > { %v372_v60 = vadd.f32 %v673_v56, %v371_v59 }
 0x162   : > { %v411_v63 = vmax.f32 %v377_v58, 0.0 }
 0x163   : > { %v767_v61 = vpop.f32.mrb[2].mxu0  ;;  %v410_v62 = vmax.f32 %v372_v60, 0.0 }
 0x164   : > { %v387_v0 = vadd.f32 %v767_v61, %v673_v56  ;;  %v381_v1 = vpop.f32.mrb[3].mxu0 }
 0x165   : > { %v382_v2 = vadd.f32 %v673_v56, %v381_v1  ;;  %806 = vmatprep.mubr.f32.mxu1 %v410_v62 }
 0x166   : > { %807 = vmatmul.mubr.f32.vlgmr.msra.gmra.mrb[0].mxu1 %v411_v63  ;;  %v413_v5 = vmax.f32 %v387_v0, 0.0 }
 0x167   : > { %v412_v3 = vmax.f32 %v382_v2, 0.0  ;;  %v770_v4 = vpop.f32.mrb[4].mxu0 }
 0x168   : > { %v397_v6 = vadd.f32 %v770_v4, %v673_v56  ;;  %v391_v7 = vpop.f32.mrb[5].mxu0 }
 0x169   : > { %v392_v8 = vadd.f32 %v673_v56, %v391_v7  ;;  %809 = vmatprep.mubr.f32.mxu1 %v412_v3 }
 0x16a   : > { %810 = vmatmul.mubr.f32.gmra.mrb[2].mxu1 %v413_v5  ;;  %v415_v11 = vmax.f32 %v397_v6, 0.0 }
 0x16b   : > { %v414_v9 = vmax.f32 %v392_v8, 0.0  ;;  %v773_v10 = vpop.f32.mrb[6].mxu0 }
 0x16c   : > { %v407_v12 = vadd.f32 %v773_v10, %v673_v56  ;;  %v401_v13 = vpop.f32.mrb[7].mxu0 }
 0x16d   : > { %v402_v14 = vadd.f32 %v673_v56, %v401_v13  ;;  %812 = vmatprep.mubr.f32.mxu1 %v414_v9 }
 0x16e   : > { %813 = vmatmul.mubr.f32.gmra.mrb[4].mxu1 %v415_v11  ;;  %v417_v16 = vmax.f32 %v407_v12, 0.0 }
 0x16f   : > { %v416_v15 = vmax.f32 %v402_v14, 0.0 }
 0x171   : > { %815 = vmatprep.mubr.f32.mxu1 %v416_v15 }
 0x172   : > { %816 = vmatmul.mubr.f32.gmra.mrb[6].mxu1 %v417_v16 }
 0x239   : > { %v808_v18 = vpop.f32.mrb[0].mxu1 }
 0x23a   : > { %v513_v19 = vadd.f32 %v808_v18, %v674_v17  ;;  %v507_v20 = vpop.f32.mrb[1].mxu1 }
 0x23b   : > { %v508_v21 = vadd.f32 %v674_v17, %v507_v20 }
 0x23c   : > { %547 = vst [vmem:[%s271_s10 + $0x8] sm:$0xff] %v513_v19 }
 0x23d   : > { %546 = vst [vmem:[%s271_s10] sm:$0xff] %v508_v21  ;;  %v811_v22 = vpop.f32.mrb[2].mxu1 }
 0x23e   : > { %v523_v23 = vadd.f32 %v811_v22, %v674_v17  ;;  %v517_v24 = vpop.f32.mrb[3].mxu1 }
 0x23f   : > { %v518_v25 = vadd.f32 %v674_v17, %v517_v24 }
 0x240   : > { %549 = vst [vmem:[%s271_s10 + $0x18] sm:$0xff] %v523_v23 }
 0x241   : > { %548 = vst [vmem:[%s271_s10 + $0x10] sm:$0xff] %v518_v25  ;;  %v814_v26 = vpop.f32.mrb[4].mxu1 }
 0x242   : > { %v533_v27 = vadd.f32 %v814_v26, %v674_v17  ;;  %v527_v28 = vpop.f32.mrb[5].mxu1 }
 0x243   : > { %v528_v29 = vadd.f32 %v674_v17, %v527_v28 }
 0x244   : > { %551 = vst [vmem:[%s271_s10 + $0x28] sm:$0xff] %v533_v27 }
 0x245   : > { %550 = vst [vmem:[%s271_s10 + $0x20] sm:$0xff] %v528_v29  ;;  %v817_v30 = vpop.f32.mrb[6].mxu1 }
 0x246   : > { %v543_v31 = vadd.f32 %v817_v30, %v674_v17  ;;  %v537_v32 = vpop.f32.mrb[7].mxu1 }
 0x247   : > { %v538_v33 = vadd.f32 %v674_v17, %v537_v32 }
 0x248   : > { %553 = vst [vmem:[%s271_s10 + $0x38] sm:$0xff] %v543_v31 }
 0x249   : > { %552 = vst [vmem:[%s271_s10 + $0x30] sm:$0xff] %v538_v33 }
 0x24a   : > { %1052 = shalt.err (!%p1049_p1)
}
 0x24b   : > { %s1053_s12 = scalar_lea.hbm %s1368_s11, 1024  ;;  %s1057_s15 = scalar_lea.hbm %s1417_s5, 2048 }
 0x24c   : > { %p1054_p13 = scmp.ne.s32.totalorder %s1368_s11, %s1053_s12  ;;  %p1058_p4 = scmp.lt.u32.totalorder %s1368_s11, %s1417_s5 }
 0x24d   : > { %p1059_p5 = scmp.lt.u32.totalorder %s1057_s15, %s1053_s12  ;;  %p1061_p11 = scmp.lt.u32.totalorder %s1053_s12, %s1368_s11 }
 0x24e   : > { %p1055_p6 = pnand %p1054_p13, %p1431_p0 }
 0x24f   : > { %p1060_p8 = por %p1059_p5, %p1058_p4 }
 0x250   : > { %p1056_p10 = pneg %p1055_p6 }
 0x251   : > { %p1062_p2 = por %p1061_p11, %p1060_p8 }
 0x253   : > { %p1063_p3 = pnand %p1062_p2, %p1056_p10 }
 0x255   : > { %1066 = shalt.err (!%p1063_p3)
}
 0x256   : > { %s1117_s13 = smov 128   ;;  %s1118_s9 = smov 8  }
 0x257   : > { %892 = dma.vmem_to_hbm [thread:$0]  (%p1431_p0), %s1363_s28, 1024, %s1368_s11, %s555_s17, %s1117_s13, %s1117_s13, %s1118_s9  }
 0x258 PF: > { %s583_s30 = sand.u32 1, %s1097_s18   ;;  %p1432_p7 = scmp.ne.s32.totalorder %s1422_s25, 0 }
 0x259   : > { %p1433_p9 = scmp.ge.s32.totalorder %s1109_s21, 2  ;;  %s584_s22 = scalar_lea.sflag [#allocation4], %s583_s30 }
 0x25b   : > { %p906_p12 = pnand %p1433_p9, %p1432_p7 }
 0x25d   : > { %1092 = dma.done.wait (!%p906_p12), %s584_s22, 1024  }
 0x25e   : > { %1094 = vsyncadd (!%p906_p12), %s584_s22, 4294966272  ;;  %p19_p1 = scmp.ge.s32.totalorder %s1265_s29, 4   ;;  %s1434_s18 = smov %s1101_s19 }
 0x25f   : > { %s1435_s19 = smov %s1105_s20  ;;  %s1436_s20 = smov %s1281_s27 }
 0x260   : > { %s1437_s21 = smov %s1265_s29  ;;  %21 = sbr.rel (!%p19_p1) target bundleno = 6 (0x6), region = 93 }
 0x267   :  { %589 = vsyncpa [#allocation3], 1 }
 0x268   :  { %591 = vsyncpa [#allocation3 + $0x1], 1 }
 0x269   :  { %592 = vsyncpa [#allocation6], 1 }
 0x26a   :  { %593 = vsyncpa [#allocation4], 1 }
 0x26b   :  { %595 = vsyncpa [#allocation4 + $0x1], 1 }

</bundles_post_ra>
